<compile_context>
chip_gen: v7x
topology: tpu7x:2x2x1
jax: 0.10.0
libtpu: 0.0.40
codegen_flags: <defaults>
</compile_context>

<pallas_src>
import functools

import jax
import jax.numpy as jnp
from jax import lax
from jax.experimental import pallas as pl
from jax.experimental.pallas import tpu as pltpu

EPS = 1e-8
_DIST_SQ_FLOOR = 1e-12  # guards log of ~0 / tiny-negative fp rounding


def _round_up(x: int, m: int) -> int:
    return ((x + m - 1) // m) * m


def _koleo_kernel(x_rows_ref, x_cols_ref, o_ref, run_max, *,
                  n_valid: int, t_row: int, t_col: int, has_pad: bool):
    i = pl.program_id(0)            # row-tile index ("parallel")
    j = pl.program_id(1)            # column-tile index (reduction, "arbitrary")
    n_col_tiles = pl.num_programs(1)
    row0 = i * t_row
    col0 = j * t_col

    # Reset the running max at the start of every row tile's column sweep.
    @pl.when(j == 0)
    def _():
        run_max[...] = jnp.full((t_row, 1), -2.0, dtype=jnp.float32)

    # bf16 x bf16 -> f32 MXU matmul of this (row-tile, col-tile) pair.
    dots = lax.dot_general(
        x_rows_ref[...], x_cols_ref[...], (((1,), (1,)), ((), ())),
        preferred_element_type=jnp.float32)          # (t_row, t_col)

    # A tile needs masking iff it intersects the diagonal (self-matches) or,
    # when N was padded, contains padded columns.  Everything else takes the
    # fast path (no iotas / compares / selects).
    diag_hit = (col0 < row0 + t_row) & (row0 < col0 + t_col)
    if has_pad:
        needs_mask = jnp.logical_or(diag_hit, col0 + t_col > n_valid)
    else:
        needs_mask = diag_hit

    @pl.when(jnp.logical_not(needs_mask))
    def _():  # fast path: interior tile.
        run_max[...] = jnp.maximum(run_max[...],
                                   jnp.max(dots, axis=1, keepdims=True))

    @pl.when(needs_mask)
    def _():  # diagonal and/or padded columns -> mask with -2 (< any cosine).
        row_ids = row0 + lax.broadcasted_iota(jnp.int32, (t_row, t_col), 0)
        col_ids = col0 + lax.broadcasted_iota(jnp.int32, (t_row, t_col), 1)
        bad = row_ids == col_ids
        if has_pad:
            bad = jnp.logical_or(bad, col_ids >= n_valid)
        masked = jnp.where(bad, jnp.float32(-2.0), dots)
        run_max[...] = jnp.maximum(run_max[...],
                                   jnp.max(masked, axis=1, keepdims=True))

    # Finalize after the last column tile:
    #   dist^2 = 2 - 2*max_dot (unit rows), contribution = -0.5*log(dist^2).
    # Output stays a (t_row, 1) column: the store happens once per row tile, so
    # its cost is negligible and this layout avoids an in-kernel relayout.
    @pl.when(j == n_col_tiles - 1)
    def _():
        dist_sq = jnp.maximum(2.0 - 2.0 * run_max[...],
                              jnp.float32(_DIST_SQ_FLOOR))
        contrib = -0.5 * jnp.log(dist_sq)            # (t_row, 1)
        if has_pad:
            rid = row0 + lax.broadcasted_iota(jnp.int32, (t_row, 1), 0)
            contrib = jnp.where(rid < n_valid, contrib, jnp.float32(0.0))
        o_ref[...] = contrib


def koleo_loss(student_output: jax.Array, *,
               row_tile: int = 1024, col_tile: int = 256) -> jax.Array:
    """Pallas implementation of KoLeoLoss.forward. Returns a scalar float32."""
    n, d = student_output.shape

    # One-time L2 normalization (== F.normalize(x, p=2, dim=-1, eps=1e-8)),
    # computed in f32, cast to bf16 for the MXU.
    x = student_output.astype(jnp.float32)
    sq = jnp.sum(x * x, axis=-1, keepdims=True)
    xn = (x * lax.rsqrt(jnp.maximum(sq, jnp.float32(EPS * EPS)))).astype(jnp.bfloat16)

    # Tile selection: MXU-friendly column tile; row tile a multiple of the
    # column tile so one pad amount serves both grid axes.
    t_col = min(_round_up(col_tile, 8), _round_up(n, 8))
    if row_tile <= t_col:
        t_row = t_col
    else:
        t_row = min(row_tile, _round_up(n, t_col))
        t_row = max(t_col, (t_row // t_col) * t_col)
    n_pad = _round_up(n, t_row)
    has_pad = n_pad != n
    if has_pad:
        xn = jnp.pad(xn, ((0, n_pad - n), (0, 0)))

    n_row_tiles = n_pad // t_row
    n_col_tiles = n_pad // t_col

    # Deeper pipelining only on the recurring column-tile stream.
    col_spec_kwargs = {}
    n_col_bufs = 2
    if n_col_tiles >= 3:
        col_spec_kwargs["pipeline_mode"] = pl.Buffered(3)
        n_col_bufs = 3
    in_specs = [
        pl.BlockSpec((t_row, d), lambda i, j: (i, 0)),                      # row tile
        pl.BlockSpec((t_col, d), lambda i, j: (j, 0), **col_spec_kwargs),   # col stream
    ]

    # Explicit scoped-VMEM budget: bf16 tiles (multi-buffered) + the f32
    # (t_row, t_col) dots working set, with headroom; never below 32 MiB.
    est = (2 * t_row * d * 2            # row tile, double-buffered, bf16
           + n_col_bufs * t_col * d * 2  # column stream, bf16
           + 3 * t_row * t_col * 4       # dots / masked temporaries (f32)
           + 8 * t_row * 4)              # run_max + output blocks
    vmem_limit = int(min(100 << 20, max(32 << 20, est * 3 // 2)))

    per_row = pl.pallas_call(
        functools.partial(_koleo_kernel, n_valid=n, t_row=t_row, t_col=t_col,
                          has_pad=has_pad),
        out_shape=jax.ShapeDtypeStruct((n_pad, 1), jnp.float32),
        grid_spec=pltpu.PrefetchScalarGridSpec(
            num_scalar_prefetch=0,
            grid=(n_row_tiles, n_col_tiles),
            in_specs=in_specs,
            out_specs=pl.BlockSpec((t_row, 1), lambda i, j: (i, 0)),
            scratch_shapes=[pltpu.VMEM((t_row, 1), jnp.float32)],  # running max
        ),
        compiler_params=pltpu.CompilerParams(
            dimension_semantics=("parallel", "arbitrary"),
            vmem_limit_bytes=vmem_limit),
    )(xn, xn)

    # per_row holds -0.5*log(dist^2) per valid row (0 for padded rows).
    return jnp.sum(per_row) / jnp.float32(n)


def _koleo_loss_ref(x: jax.Array) -> jax.Array:
    """Plain-JAX reference mirroring the PyTorch module."""
    x = x.astype(jnp.float32)
    n = x.shape[0]
    norms = jnp.linalg.norm(x, axis=-1, keepdims=True)
    x_n = x / jnp.maximum(norms, EPS)
    dots = x_n @ x_n.T
    dots = dots.at[jnp.arange(n), jnp.arange(n)].set(-1.0)
    ind = jnp.argmax(dots, axis=1)
    diff = x_n - x_n[ind] + EPS
    dist = jnp.sqrt(jnp.sum(diff * diff, axis=-1))
    return -jnp.mean(jnp.log(dist + EPS))


if __name__ == "__main__":
    # Small shape consistent with the module: batch of N=16 feature vectors, D=32.
    key = jax.random.PRNGKey(0)
    student_output = jax.random.normal(key, (16, 32), dtype=jnp.float32)
    loss = koleo_loss(student_output)
    jax.block_until_ready(loss)
    ref = _koleo_loss_ref(student_output)
    assert jnp.allclose(loss, ref, atol=1e-2, rtol=1e-2), (loss, ref)

    # Tiled + padded path: asymmetric tiles, multiple row/col tiles, Buffered(3)
    # column stream, fast path and both masking branches all exercised.
    k1, k2 = jax.random.split(jax.random.PRNGKey(1))
    x_big = jax.random.normal(k1, (300, 64), dtype=jnp.float32)
    loss2 = koleo_loss(x_big, row_tile=256, col_tile=128)
    jax.block_until_ready(loss2)
    ref2 = _koleo_loss_ref(x_big)
    assert jnp.allclose(loss2, ref2, atol=1e-2, rtol=1e-2), (loss2, ref2)

    # Default (production) asymmetric tiling on a bf16 input.
    x_med = jax.random.normal(k2, (700, 96), dtype=jnp.bfloat16)
    loss3 = koleo_loss(x_med)
    jax.block_until_ready(loss3)
    ref3 = _koleo_loss_ref(x_med)
    assert jnp.allclose(loss3, ref3, atol=1e-2, rtol=1e-2), (loss3, ref3)

    print("KERNEL_OK")
</pallas_src>

<mosaic_0001>
module attributes {stable_mosaic.version = 11 : i64} {
  func.func @_koleo_kernel(%arg0: i32, %arg1: i32, %arg2: memref<16x32xbf16, #tpu.memory_space<vmem>>, %arg3: memref<16x32xbf16, #tpu.memory_space<vmem>>, %arg4: memref<16x1xf32, #tpu.memory_space<vmem>>, %arg5: memref<16x1xf32, #tpu.memory_space<vmem>>) attributes {dimension_semantics = [#tpu.dimension_semantics<parallel>, #tpu.dimension_semantics<arbitrary>], iteration_bounds = array<i64: 1, 1>, scalar_prefetch = 0 : i64, scratch_operands = 1 : i64, tpu.core_type = #tpu.core_type<tc>, window_params = [{transform_indices = @transform_0, window_bounds = array<i64: 16, 32>}, {transform_indices = @transform_1, window_bounds = array<i64: 16, 32>}, {transform_indices = @transform_2, window_bounds = array<i64: 16, 1>}]} {
    %c16_i32 = arith.constant 16 : i32
    %0 = arith.muli %arg0, %c16_i32 : i32
    %c16_i32_0 = arith.constant 16 : i32
    %1 = arith.muli %arg1, %c16_i32_0 : i32
    %c0_i32 = arith.constant 0 : i32
    %2 = arith.cmpi eq, %arg1, %c0_i32 : i32
    %3 = arith.extui %2 : i1 to i32
    %c0_i32_1 = arith.constant 0 : i32
    %4 = arith.cmpi ne, %3, %c0_i32_1 : i32
    scf.if %4 {
      %cst_11 = arith.constant -2.000000e+00 : f32
      %21 = vector.broadcast %cst_11 : f32 to vector<16x1xf32>
      %c0_12 = arith.constant 0 : index
      %c0_13 = arith.constant 0 : index
      %22 = vector.load %arg5[%c0_12, %c0_13] : memref<16x1xf32, #tpu.memory_space<vmem>>, vector<16x1xf32>
      tpu.vector_store %arg5[%c0_12, %c0_13], %21 {strides = array<i32>} : memref<16x1xf32, #tpu.memory_space<vmem>>, vector<16x1xf32>,
    } else {
    }
    %c0 = arith.constant 0 : index
    %c0_2 = arith.constant 0 : index
    %5 = vector.load %arg2[%c0, %c0_2] : memref<16x32xbf16, #tpu.memory_space<vmem>>, vector<16x32xbf16>
    %c0_3 = arith.constant 0 : index
    %c0_4 = arith.constant 0 : index
    %6 = vector.load %arg3[%c0_3, %c0_4] : memref<16x32xbf16, #tpu.memory_space<vmem>>, vector<16x32xbf16>
    %cst = arith.constant dense<0.000000e+00> : vector<16x16xf32>
    %7 = tpu.matmul %5, %6, %cst {dimension_numbers = #tpu.dot_dimension_numbers<[1], [1], [0], [0], [0, 0, 1, 0], [], []>} : vector<16x32xbf16>, vector<16x32xbf16>, vector<16x16xf32> -> vector<16x16xf32>
    %c16_i32_5 = arith.constant 16 : i32
    %8 = arith.addi %0, %c16_i32_5 : i32
    %9 = arith.cmpi slt, %1, %8 : i32
    %c16_i32_6 = arith.constant 16 : i32
    %10 = arith.addi %1, %c16_i32_6 : i32
    %11 = arith.cmpi slt, %0, %10 : i32
    %12 = arith.andi %9, %11 : i1
    %true = arith.constant true
    %13 = arith.xori %12, %true : i1
    %14 = arith.extui %13 : i1 to i32
    %c0_i32_7 = arith.constant 0 : i32
    %15 = arith.cmpi ne, %14, %c0_i32_7 : i32
    scf.if %15 {
      %c0_11 = arith.constant 0 : index
      %c0_12 = arith.constant 0 : index
      %21 = vector.load %arg5[%c0_11, %c0_12] : memref<16x1xf32, #tpu.memory_space<vmem>>, vector<16x1xf32>
      %cst_13 = arith.constant dense<0xFF800000> : vector<16xf32>
      %22 = vector.multi_reduction <maximumf>, %7, %cst_13 [1] : vector<16x16xf32> to vector<16xf32>
      %23 = vector.shape_cast %22 : vector<16xf32> to vector<16x1xf32>
      %24 = arith.maximumf %21, %23 : vector<16x1xf32>
      %c0_14 = arith.constant 0 : index
      %c0_15 = arith.constant 0 : index
      %25 = vector.load %arg5[%c0_14, %c0_15] : memref<16x1xf32, #tpu.memory_space<vmem>>, vector<16x1xf32>
      tpu.vector_store %arg5[%c0_14, %c0_15], %24 {strides = array<i32>} : memref<16x1xf32, #tpu.memory_space<vmem>>, vector<16x1xf32>,
    } else {
    }
    %16 = arith.extui %12 : i1 to i32
    %c0_i32_8 = arith.constant 0 : i32
    %17 = arith.cmpi ne, %16, %c0_i32_8 : i32
    scf.if %17 {
      %21 = tpu.iota {dimensions = array<i32: 0>} : vector<16x16xi32>
      %22 = vector.broadcast %0 : i32 to vector<16x16xi32>
      %23 = arith.addi %22, %21 : vector<16x16xi32>
      %24 = tpu.iota {dimensions = array<i32: 1>} : vector<16x16xi32>
      %25 = vector.broadcast %1 : i32 to vector<16x16xi32>
      %26 = arith.addi %25, %24 : vector<16x16xi32>
      %27 = arith.cmpi eq, %23, %26 : vector<16x16xi32>
      %cst_11 = arith.constant -2.000000e+00 : f32
      %28 = vector.broadcast %cst_11 : f32 to vector<16x16xf32>
      %29 = arith.select %27, %28, %7 : vector<16x16xi1>, vector<16x16xf32>
      %c0_12 = arith.constant 0 : index
      %c0_13 = arith.constant 0 : index
      %30 = vector.load %arg5[%c0_12, %c0_13] : memref<16x1xf32, #tpu.memory_space<vmem>>, vector<16x1xf32>
      %cst_14 = arith.constant dense<0xFF800000> : vector<16xf32>
      %31 = vector.multi_reduction <maximumf>, %29, %cst_14 [1] : vector<16x16xf32> to vector<16xf32>
      %32 = vector.shape_cast %31 : vector<16xf32> to vector<16x1xf32>
      %33 = arith.maximumf %30, %32 : vector<16x1xf32>
      %c0_15 = arith.constant 0 : index
      %c0_16 = arith.constant 0 : index
      %34 = vector.load %arg5[%c0_15, %c0_16] : memref<16x1xf32, #tpu.memory_space<vmem>>, vector<16x1xf32>
      tpu.vector_store %arg5[%c0_15, %c0_16], %33 {strides = array<i32>} : memref<16x1xf32, #tpu.memory_space<vmem>>, vector<16x1xf32>,
    } else {
    }
    %c0_i32_9 = arith.constant 0 : i32
    %18 = arith.cmpi eq, %arg1, %c0_i32_9 : i32
    %19 = arith.extui %18 : i1 to i32
    %c0_i32_10 = arith.constant 0 : i32
    %20 = arith.cmpi ne, %19, %c0_i32_10 : i32
    scf.if %20 {
      %c0_11 = arith.constant 0 : index
      %c0_12 = arith.constant 0 : index
      %21 = vector.load %arg5[%c0_11, %c0_12] : memref<16x1xf32, #tpu.memory_space<vmem>>, vector<16x1xf32>
      %cst_13 = arith.constant 2.000000e+00 : f32
      %22 = vector.broadcast %cst_13 : f32 to vector<16x1xf32>
      %23 = arith.mulf %22, %21 : vector<16x1xf32>
      %cst_14 = arith.constant 2.000000e+00 : f32
      %24 = vector.broadcast %cst_14 : f32 to vector<16x1xf32>
      %25 = arith.subf %24, %23 : vector<16x1xf32>
      %cst_15 = arith.constant 9.99999996E-13 : f32
      %26 = vector.broadcast %cst_15 : f32 to vector<16x1xf32>
      %27 = arith.maximumf %25, %26 : vector<16x1xf32>
      %28 = math.log %27 : vector<16x1xf32>
      %cst_16 = arith.constant -5.000000e-01 : f32
      %29 = vector.broadcast %cst_16 : f32 to vector<16x1xf32>
      %30 = arith.mulf %29, %28 : vector<16x1xf32>
      %c0_17 = arith.constant 0 : index
      %c0_18 = arith.constant 0 : index
      %31 = vector.load %arg4[%c0_17, %c0_18] : memref<16x1xf32, #tpu.memory_space<vmem>>, vector<16x1xf32>
      tpu.vector_store %arg4[%c0_17, %c0_18], %30 {strides = array<i32>} : memref<16x1xf32, #tpu.memory_space<vmem>>, vector<16x1xf32>,
    } else {
    }
    return
  }
  func.func @transform_0(%arg0: i32, %arg1: i32) -> (i32, i32) {
    %c0_i32 = arith.constant 0 : i32
    %c0_i32_0 = arith.constant 0 : i32
    return %arg0, %c0_i32 : i32, i32
  }
  func.func @transform_1(%arg0: i32, %arg1: i32) -> (i32, i32) {
    %c0_i32 = arith.constant 0 : i32
    %c0_i32_0 = arith.constant 0 : i32
    return %arg1, %c0_i32 : i32, i32
  }
  func.func @transform_2(%arg0: i32, %arg1: i32) -> (i32, i32) {
    %c0_i32 = arith.constant 0 : i32
    %c0_i32_0 = arith.constant 0 : i32
    return %arg0, %c0_i32 : i32, i32
  }
}

</mosaic_0001>

<bundles_post_ra>
// kernel: tpu_custom_call.1
= control target key start
LH: loop header
LB: loop body
LE: loop exit
PB: predicated region body
PF: predicated region fallthrough
CT: control target
= control target key end

     0   :  { %7 = vsyncpa [#allocation4], 0  ;;  %s320_s0 = inlined_call_operand.hbm [shape: bf16[16,32], index: 0, kind: input, shape index: {}]   ;;  %s321_s1 = inlined_call_operand.hbm [shape: bf16[16,32], index: 1, kind: input, shape index: {}]   ;;  %s322_s2 = inlined_call_operand.vmem [shape: f32[16,1], index: 2, kind: output, shape index: {}]  }
   0x1   :  { %8 = vsyncpa [#allocation6], 0  ;;  %s262_s9 = smov [#allocation3]   ;;  %s214_s13 = scalar_lea.hbm %s320_s0, 128 }
   0x2   :  { %s14_s10 = sshll.u32 %s262_s9, 4  ;;  %p215_p0 = scmp.ne.s32.totalorder %s320_s0, %s214_s13  ;;  %s15_s10 = int_to_ptr.vmem [resolvable:$true] %s14_s10 }
   0x3   :  { %p218_p1 = scmp.lt.u32.totalorder %s214_s13, %s320_s0 }
   0x5   :  { %p220_p2 = pnand %p218_p1, %p215_p0 }
   0x7   :  { %223 = shalt.err (!%p220_p2)
}
   0x8   :  { %s224_s18 = scalar_lea.vmem %s15_s10, 128  ;;  %p229_p4 = scmp.lt.s32.totalorder %s15_s10, %s15_s10 }
   0x9   :  { %p225_p3 = scmp.ne.s32.totalorder %s15_s10, %s224_s18  ;;  %p230_p5 = scmp.lt.s32.totalorder %s224_s18, %s224_s18 }
   0xb   :  { %p231_p6 = por %p230_p5, %p229_p4 }
   0xd   :  { %p232_p7 = pnand %p231_p6, %p225_p3 }
   0xf   :  { %235 = shalt.err (!%p232_p7)
}
  0x10   :  { %s263_s19 = smov 64   ;;  %s264_s20 = smov 4  }
  0x11   :  { %20 = dma.hbm_to_vmem [thread:$0]  %s320_s0, 128, %s15_s10, [#allocation4], %s263_s19, %s263_s19, %s264_s20  }
  0x12   :  { %s265_s23 = smov [#allocation5]   ;;  %s236_s27 = scalar_lea.hbm %s321_s1, 128 }
  0x13   :  { %s26_s24 = sshll.u32 %s265_s23, 4  ;;  %p237_p8 = scmp.ne.s32.totalorder %s321_s1, %s236_s27  ;;  %s27_s24 = int_to_ptr.vmem [resolvable:$true] %s26_s24 }
  0x14   :  { %p240_p9 = scmp.lt.u32.totalorder %s236_s27, %s321_s1 }
  0x16   :  { %p242_p10 = pnand %p240_p9, %p237_p8 }
  0x18   :  { %245 = shalt.err (!%p242_p10)
}
  0x19   :  { %s246_s4 = scalar_lea.vmem %s27_s24, 128  ;;  %p251_p12 = scmp.lt.s32.totalorder %s27_s24, %s27_s24 }
  0x1a   :  { %p247_p11 = scmp.ne.s32.totalorder %s27_s24, %s246_s4  ;;  %p252_p13 = scmp.lt.s32.totalorder %s246_s4, %s246_s4 }
  0x1c   :  { %p253_p0 = por %p252_p13, %p251_p12 }
  0x1e   :  { %p254_p1 = pnand %p253_p0, %p247_p11 }
  0x20   :  { %257 = shalt.err (!%p254_p1)
}
  0x21   :  { %32 = dma.hbm_to_vmem [thread:$0]  %s321_s1, 128, %s27_s24, [#allocation6], %s263_s19, %s263_s19, %s264_s20  }
  0x22   :  { %258 = dma.done.wait [#allocation4], 128  }
  0x23   :  { %259 = vsyncadd [#allocation4], 4294967168 }
  0x24   :  { %260 = dma.done.wait [#allocation6], 128  }
  0x25   :  { %261 = vsyncadd [#allocation6], 4294967168  ;;  %v266_v0 = vmov 0.0   ;;  %vm267_vm0 = vmmov 0   ;;  %vm63_vm1 = vcmask 261120   ;;  %v208_v1 = vld [vmem:[#allocation5] sm:$0xff]   ;;  %v119_v5 = vlaneseq }
  0x26   :  { %195 = vmatprep.subr.bf16.mxu0 %v266_v0  ;;  %197 = vmatprep.mubr.msk.bf16.mxu0 %vm267_vm0, %v266_v0  ;;  %v68_v2 = vsel %vm63_vm1, %v208_v1, 0  ;;  %v209_v3 = vld [vmem:[#allocation3] sm:$0xff]   ;;  %vm46_vm2 = vcmask 7168   ;;  %v268_v4 = vmov -2.0   ;;  %vm135_vm4 = vcmask 130048  }
  0x27   :  { %196 = vmatpush3.bf16.xpose.msra.mxu0 %v68_v2  ;;  %47 = vst.msk [vmem:[#allocation2] sm:$0xff] %vm46_vm2, %v268_v4  ;;  %48 = vst.msk [vmem:[#allocation2 + $0x8] sm:$0xff] %vm46_vm2, %v268_v4  ;;  %v120_v6 = vshrl.u32 %v119_v5, 7  ;;  %v126_v7 = vand.u32 127, %v119_v5 }
  0x29   :  { %v121_v8 = vadd.s32 8, %v120_v6  ;;  %vm129_vm3 = vcmp.eq.s32.totalorder %v120_v6, %v126_v7 }
  0x2b   :  { %vm130_vm5 = vcmp.eq.s32.totalorder %v121_v8, %v126_v7 }
  0x2e   :  { %198 = vmatmul.mubr.msk.bf16.vlgmr.msra.gmra.mrb[0].mxu0 %vm63_vm1, %v209_v3  ;;  %v133_v17 = vld [vmem:[#allocation2] sm:$0xff]  ;;  %v134_v20 = vld [vmem:[#allocation2 + $0x8] sm:$0xff] }
 0x101   :  { %v104_v9 = vpop.f32.mrb[0].mxu0 }
 0x102   :  { %v131_v10 = vsel %vm129_vm3, -2.0, %v104_v9  ;;  %v199_v11 = vpop.f32.mrb[1].mxu0 }
 0x103   :  { %v107_v12 = vpop.f32.mrb[2].mxu0  ;;  %v136_v13 = vsel %vm135_vm4, %v131_v10, -inf }
 0x104   :  { %v132_v14 = vsel %vm130_vm5, -2.0, %v107_v12  ;;  %137 = vmax.xlane.f32.xlu0 %v136_v13  ;;  %v200_v15 = vpop.f32.mrb[3].mxu0 }
 0x105   :  { %v139_v16 = vsel %vm135_vm4, %v132_v14, -inf }
 0x108   :  { %140 = vmax.xlane.f32.xlu0 %v139_v16 }
 0x191   :  { %v138_v18 = vpop.xlane.xlu0 %137 }
 0x192   :  { %v142_v19 = vmax.f32 %v133_v17, %v138_v18 }
 0x194   :  { %145 = vst.msk [vmem:[#allocation2] sm:$0xff] %vm46_vm2, %v142_v19 }
 0x195   :  { %v141_v21 = vpop.xlane.xlu0 %140 }
 0x196   :  { %v143_v22 = vmax.f32 %v134_v20, %v141_v21 }
 0x198   :  { %146 = vst.msk [vmem:[#allocation2 + $0x8] sm:$0xff] %vm46_vm2, %v143_v22 }
 0x19b   :  { %v167_v23 = vld [vmem:[#allocation2] sm:$0xff] }
 0x19c   :  { %v169_v24 = vmul.f32 2.0, %v167_v23 }
 0x19e   :  { %v171_v25 = vsub.f32 2.0, %v169_v24 }
 0x19f   :  { %v168_v26 = vld [vmem:[#allocation2 + $0x8] sm:$0xff] }
 0x1a0   :  { %v173_v27 = vmax.f32 %v171_v25, 1e-12  ;;  %v170_v28 = vmul.f32 2.0, %v168_v26 }
 0x1a2   :  { %210 = vlog2.f32 %v173_v27  ;;  %v172_v29 = vsub.f32 2.0, %v170_v28 }
 0x1a4   :  { %v174_v30 = vmax.f32 %v172_v29, 1e-12 }
 0x1a6   :  { %212 = vlog2.f32 %v174_v30 }
 0x1ac   :  { %v211_v31 = vpop.eup %210 }
 0x1ad   :  { %v176_v32 = vmul.f32 0.6931472, %v211_v31 }
 0x1af   :  { %v179_v33 = vmul.f32 -0.5, %v176_v32 }
 0x1b0   :  { %v213_v34 = vpop.eup %212 }
 0x1b1   :  { %182 = vst.msk [vmem:[%s322_s2] sm:$0xff] %vm46_vm2, %v179_v33  ;;  %v178_v35 = vmul.f32 0.6931472, %v213_v34 }
 0x1b3   :  { %v180_v36 = vmul.f32 -0.5, %v178_v35 }
 0x1b5   :  { %183 = vst.msk [vmem:[%s322_s2 + $0x8] sm:$0xff] %vm46_vm2, %v180_v36 }
 0x1b6   :  { %188 = vsyncpa [#allocation4], 1 }
 0x1b7   :  { %189 = vsyncpa [#allocation6], 1 }

</bundles_post_ra>
